<compile_context>
chip_gen: v5e
topology: v5e:2x2
jax: 0.10.0
libtpu: 0.0.40
codegen_flags: <defaults>
</compile_context>

<pallas_src>
import functools

import jax
import jax.numpy as jnp
from jax.experimental import pallas as pl
from jax.experimental.pallas import tpu as pltpu


_LANE = 128
_SUBLANE = 8


def _round_up(n: int, m: int) -> int:
    return ((n + m - 1) // m) * m


def _pad2d(a, rows: int, cols: int):
    r, c = a.shape
    if r == rows and c == cols:
        return a
    return jnp.pad(a, ((0, rows - r), (0, cols - c)))


def policy_net_kernel(x_ref,
                      w1_ref, b1_ref,
                      w2_ref, b2_ref,
                      w3_ref, b3_ref,
                      w4_ref, b4_ref,
                      o_ref,
                      *, out_dim: int):
    """One batch tile of relu(fc1)->relu(fc2)->relu(fc3)->softmax(fc4)."""
    x = x_ref[...]

    h = jnp.dot(x, w1_ref[...], preferred_element_type=jnp.float32) + b1_ref[...]
    h = jnp.maximum(h, 0.0)

    h = jnp.dot(h, w2_ref[...], preferred_element_type=jnp.float32) + b2_ref[...]
    h = jnp.maximum(h, 0.0)

    h = jnp.dot(h, w3_ref[...], preferred_element_type=jnp.float32) + b3_ref[...]
    h = jnp.maximum(h, 0.0)

    logits = jnp.dot(h, w4_ref[...], preferred_element_type=jnp.float32) + b4_ref[...]

    # Lane-padded columns beyond the real output width get a huge negative
    # logit so they contribute exactly zero to the softmax normalization.
    if logits.shape[-1] != out_dim:
        col = jax.lax.broadcasted_iota(jnp.int32, logits.shape, dimension=1)
        logits = jnp.where(col < out_dim, logits, -1e30)

    # Numerically-stable softmax over the last (lane) axis.  Exact divide so
    # each row sums to 1.0 (approx reciprocal drifted the sum off by ~4e-3).
    m = jnp.max(logits, axis=-1, keepdims=True)
    e = jnp.exp(logits - m)
    denom = jnp.sum(e, axis=-1, keepdims=True)
    o_ref[...] = (e / denom).astype(o_ref.dtype)


def policy_network_forward(x, params, *, block_rows: int = 1024):
    """x: (B, input_dim) float32 -> (B, output_dim) float32 softmax probs."""
    (w1, b1), (w2, b2), (w3, b3), (w4, b4) = params
    B, in_dim = x.shape
    out_dim = w4.shape[1]

    # ---- lane-pad every feature dimension to a multiple of 128 -------------
    d_in = _round_up(in_dim, _LANE)
    d_h1 = _round_up(w1.shape[1], _LANE)   # 64  -> 128
    d_h2 = _round_up(w2.shape[1], _LANE)   # 128 -> 128
    d_h3 = _round_up(w3.shape[1], _LANE)   # 64  -> 128
    d_out = _round_up(out_dim, _LANE)

    w1p = _pad2d(w1, d_in, d_h1); b1p = _pad2d(b1, 1, d_h1)
    w2p = _pad2d(w2, d_h1, d_h2); b2p = _pad2d(b2, 1, d_h2)
    w3p = _pad2d(w3, d_h2, d_h3); b3p = _pad2d(b3, 1, d_h3)
    w4p = _pad2d(w4, d_h3, d_out); b4p = _pad2d(b4, 1, d_out)

    # ---- batch tiling -------------------------------------------------------
    tm = max(_SUBLANE,
             min(_round_up(block_rows, _SUBLANE), _round_up(B, _SUBLANE)))
    b_pad = _round_up(B, tm)
    x_p = _pad2d(x.astype(jnp.float32), b_pad, d_in)
    grid = (b_pad // tm,)

    vmem = pltpu.MemorySpace.VMEM
    tile_spec = lambda shape: pl.BlockSpec(shape, lambda i: (i, 0),
                                           memory_space=vmem)
    resident = lambda shape: pl.BlockSpec(shape, lambda i: (0, 0),
                                          memory_space=vmem)

    out = pl.pallas_call(
        functools.partial(policy_net_kernel, out_dim=out_dim),
        out_shape=jax.ShapeDtypeStruct((b_pad, d_out), jnp.float32),
        grid=grid,
        in_specs=[
            tile_spec((tm, d_in)),
            resident((d_in, d_h1)), resident((1, d_h1)),
            resident((d_h1, d_h2)), resident((1, d_h2)),
            resident((d_h2, d_h3)), resident((1, d_h3)),
            resident((d_h3, d_out)), resident((1, d_out)),
        ],
        out_specs=tile_spec((tm, d_out)),
        compiler_params=pltpu.CompilerParams(
            dimension_semantics=("parallel",),
        ),
    )(x_p, w1p, b1p, w2p, b2p, w3p, b3p, w4p, b4p)

    return out[:B, :out_dim]


def init_params(key, input_dim, output_dim):
    """PyTorch-Linear-style init (uniform +/- 1/sqrt(fan_in)); W stored (in, out)."""
    dims = [(input_dim, 64), (64, 128), (128, 64), (64, output_dim)]
    params = []
    for (fan_in, fan_out) in dims:
        key, kw, kb = jax.random.split(key, 3)
        bound = 1.0 / jnp.sqrt(jnp.float32(fan_in))
        w = jax.random.uniform(kw, (fan_in, fan_out), jnp.float32, -bound, bound)
        b = jax.random.uniform(kb, (1, fan_out), jnp.float32, -bound, bound)
        params.append((w, b))
    return params


def reference_forward(x, params):
    """Pure-JAX reference for correctness checking."""
    (w1, b1), (w2, b2), (w3, b3), (w4, b4) = params
    h = jax.nn.relu(x @ w1 + b1)
    h = jax.nn.relu(h @ w2 + b2)
    h = jax.nn.relu(h @ w3 + b3)
    return jax.nn.softmax(h @ w4 + b4, axis=-1)


if __name__ == "__main__":
    key = jax.random.PRNGKey(0)
    input_dim, output_dim, batch = 32, 16, 8

    kx, kp, kx2 = jax.random.split(key, 3)
    x = jax.random.normal(kx, (batch, input_dim), dtype=jnp.float32)
    params = init_params(kp, input_dim, output_dim)

    out = jax.block_until_ready(policy_network_forward(x, params))
    ref = reference_forward(x, params)
    assert out.shape == (batch, output_dim)
    assert jnp.allclose(out, ref, atol=2e-3, rtol=2e-3)
    assert jnp.allclose(jnp.sum(out, axis=-1), 1.0, atol=1e-4)

    # Exercise the batch grid: multiple row tiles + ragged batch padding.
    x2 = jax.random.normal(kx2, (40, input_dim), dtype=jnp.float32)
    out2 = jax.block_until_ready(
        policy_network_forward(x2, params, block_rows=16))
    ref2 = reference_forward(x2, params)
    assert out2.shape == (40, output_dim)
    assert jnp.allclose(out2, ref2, atol=2e-3, rtol=2e-3)
    assert jnp.allclose(jnp.sum(out2, axis=-1), 1.0, atol=1e-4)

    print("KERNEL_OK")
</pallas_src>

<mosaic_0001>
module attributes {stable_mosaic.version = 11 : i64} {
  func.func @policy_net_kernel(%arg0: i32, %arg1: memref<8x128xf32, #tpu.memory_space<vmem>>, %arg2: memref<128x128xf32, #tpu.memory_space<vmem>>, %arg3: memref<1x128xf32, #tpu.memory_space<vmem>>, %arg4: memref<128x128xf32, #tpu.memory_space<vmem>>, %arg5: memref<1x128xf32, #tpu.memory_space<vmem>>, %arg6: memref<128x128xf32, #tpu.memory_space<vmem>>, %arg7: memref<1x128xf32, #tpu.memory_space<vmem>>, %arg8: memref<128x128xf32, #tpu.memory_space<vmem>>, %arg9: memref<1x128xf32, #tpu.memory_space<vmem>>, %arg10: memref<8x128xf32, #tpu.memory_space<vmem>>) attributes {dimension_semantics = [#tpu.dimension_semantics<parallel>], iteration_bounds = array<i64: 1>, scalar_prefetch = 0 : i64, scratch_operands = 0 : i64, tpu.core_type = #tpu.core_type<tc>, window_params = [{transform_indices = @transform_0, window_bounds = array<i64: 8, 128>}, {pipeline_mode = #tpu.pipeline_mode<synchronous>, transform_indices = @transform_1, window_bounds = array<i64: 128, 128>}, {pipeline_mode = #tpu.pipeline_mode<synchronous>, transform_indices = @transform_2, window_bounds = array<i64: 1, 128>}, {pipeline_mode = #tpu.pipeline_mode<synchronous>, transform_indices = @transform_3, window_bounds = array<i64: 128, 128>}, {pipeline_mode = #tpu.pipeline_mode<synchronous>, transform_indices = @transform_4, window_bounds = array<i64: 1, 128>}, {pipeline_mode = #tpu.pipeline_mode<synchronous>, transform_indices = @transform_5, window_bounds = array<i64: 128, 128>}, {pipeline_mode = #tpu.pipeline_mode<synchronous>, transform_indices = @transform_6, window_bounds = array<i64: 1, 128>}, {pipeline_mode = #tpu.pipeline_mode<synchronous>, transform_indices = @transform_7, window_bounds = array<i64: 128, 128>}, {pipeline_mode = #tpu.pipeline_mode<synchronous>, transform_indices = @transform_8, window_bounds = array<i64: 1, 128>}, {transform_indices = @transform_9, window_bounds = array<i64: 8, 128>}]} {
    %c0 = arith.constant 0 : index
    %c0_0 = arith.constant 0 : index
    %0 = vector.load %arg1[%c0, %c0_0] : memref<8x128xf32, #tpu.memory_space<vmem>>, vector<8x128xf32>
    %c0_1 = arith.constant 0 : index
    %c0_2 = arith.constant 0 : index
    %1 = vector.load %arg2[%c0_1, %c0_2] : memref<128x128xf32, #tpu.memory_space<vmem>>, vector<128x128xf32>
    %cst = arith.constant dense<0.000000e+00> : vector<8x128xf32>
    %2 = tpu.matmul %0, %1, %cst {dimension_numbers = #tpu.dot_dimension_numbers<[1], [0], [0], [1], [0, 0, 1, 1], [], []>} : vector<8x128xf32>, vector<128x128xf32>, vector<8x128xf32> -> vector<8x128xf32>
    %c0_3 = arith.constant 0 : index
    %c0_4 = arith.constant 0 : index
    %3 = vector.load %arg3[%c0_3, %c0_4] : memref<1x128xf32, #tpu.memory_space<vmem>>, vector<1x128xf32>
    %4 = vector.broadcast %3 : vector<1x128xf32> to vector<8x128xf32>
    %5 = arith.addf %2, %4 : vector<8x128xf32>
    %cst_5 = arith.constant 0.000000e+00 : f32
    %6 = vector.broadcast %cst_5 : f32 to vector<8x128xf32>
    %7 = arith.maximumf %5, %6 : vector<8x128xf32>
    %c0_6 = arith.constant 0 : index
    %c0_7 = arith.constant 0 : index
    %8 = vector.load %arg4[%c0_6, %c0_7] : memref<128x128xf32, #tpu.memory_space<vmem>>, vector<128x128xf32>
    %cst_8 = arith.constant dense<0.000000e+00> : vector<8x128xf32>
    %9 = tpu.matmul %7, %8, %cst_8 {dimension_numbers = #tpu.dot_dimension_numbers<[1], [0], [0], [1], [0, 0, 1, 1], [], []>} : vector<8x128xf32>, vector<128x128xf32>, vector<8x128xf32> -> vector<8x128xf32>
    %c0_9 = arith.constant 0 : index
    %c0_10 = arith.constant 0 : index
    %10 = vector.load %arg5[%c0_9, %c0_10] : memref<1x128xf32, #tpu.memory_space<vmem>>, vector<1x128xf32>
    %11 = vector.broadcast %10 : vector<1x128xf32> to vector<8x128xf32>
    %12 = arith.addf %9, %11 : vector<8x128xf32>
    %cst_11 = arith.constant 0.000000e+00 : f32
    %13 = vector.broadcast %cst_11 : f32 to vector<8x128xf32>
    %14 = arith.maximumf %12, %13 : vector<8x128xf32>
    %c0_12 = arith.constant 0 : index
    %c0_13 = arith.constant 0 : index
    %15 = vector.load %arg6[%c0_12, %c0_13] : memref<128x128xf32, #tpu.memory_space<vmem>>, vector<128x128xf32>
    %cst_14 = arith.constant dense<0.000000e+00> : vector<8x128xf32>
    %16 = tpu.matmul %14, %15, %cst_14 {dimension_numbers = #tpu.dot_dimension_numbers<[1], [0], [0], [1], [0, 0, 1, 1], [], []>} : vector<8x128xf32>, vector<128x128xf32>, vector<8x128xf32> -> vector<8x128xf32>
    %c0_15 = arith.constant 0 : index
    %c0_16 = arith.constant 0 : index
    %17 = vector.load %arg7[%c0_15, %c0_16] : memref<1x128xf32, #tpu.memory_space<vmem>>, vector<1x128xf32>
    %18 = vector.broadcast %17 : vector<1x128xf32> to vector<8x128xf32>
    %19 = arith.addf %16, %18 : vector<8x128xf32>
    %cst_17 = arith.constant 0.000000e+00 : f32
    %20 = vector.broadcast %cst_17 : f32 to vector<8x128xf32>
    %21 = arith.maximumf %19, %20 : vector<8x128xf32>
    %c0_18 = arith.constant 0 : index
    %c0_19 = arith.constant 0 : index
    %22 = vector.load %arg8[%c0_18, %c0_19] : memref<128x128xf32, #tpu.memory_space<vmem>>, vector<128x128xf32>
    %cst_20 = arith.constant dense<0.000000e+00> : vector<8x128xf32>
    %23 = tpu.matmul %21, %22, %cst_20 {dimension_numbers = #tpu.dot_dimension_numbers<[1], [0], [0], [1], [0, 0, 1, 1], [], []>} : vector<8x128xf32>, vector<128x128xf32>, vector<8x128xf32> -> vector<8x128xf32>
    %c0_21 = arith.constant 0 : index
    %c0_22 = arith.constant 0 : index
    %24 = vector.load %arg9[%c0_21, %c0_22] : memref<1x128xf32, #tpu.memory_space<vmem>>, vector<1x128xf32>
    %25 = vector.broadcast %24 : vector<1x128xf32> to vector<8x128xf32>
    %26 = arith.addf %23, %25 : vector<8x128xf32>
    %27 = tpu.iota {dimensions = array<i32: 1>} : vector<8x128xi32>
    %c16_i32 = arith.constant 16 : i32
    %28 = vector.broadcast %c16_i32 : i32 to vector<8x128xi32>
    %29 = arith.cmpi slt, %27, %28 : vector<8x128xi32>
    %cst_23 = arith.constant -1.000000e+30 : f32
    %30 = vector.broadcast %cst_23 : f32 to vector<8x128xf32>
    %31 = arith.select %29, %26, %30 : vector<8x128xi1>, vector<8x128xf32>
    %cst_24 = arith.constant dense<0xFF800000> : vector<8xf32>
    %32 = vector.multi_reduction <maximumf>, %31, %cst_24 [1] : vector<8x128xf32> to vector<8xf32>
    %33 = vector.shape_cast %32 : vector<8xf32> to vector<8x1xf32>
    %34 = vector.broadcast %33 : vector<8x1xf32> to vector<8x128xf32>
    %35 = arith.subf %31, %34 : vector<8x128xf32>
    %36 = math.exp %35 : vector<8x128xf32>
    %cst_25 = arith.constant dense<0.000000e+00> : vector<8xf32>
    %37 = vector.multi_reduction <add>, %36, %cst_25 [1] : vector<8x128xf32> to vector<8xf32>
    %38 = vector.shape_cast %37 : vector<8xf32> to vector<8x1xf32>
    %39 = vector.broadcast %38 : vector<8x1xf32> to vector<8x128xf32>
    %40 = arith.divf %36, %39 : vector<8x128xf32>
    %c0_26 = arith.constant 0 : index
    %c0_27 = arith.constant 0 : index
    %41 = vector.load %arg10[%c0_26, %c0_27] : memref<8x128xf32, #tpu.memory_space<vmem>>, vector<8x128xf32>
    tpu.vector_store %arg10[%c0_26, %c0_27], %40 {strides = array<i32>} : memref<8x128xf32, #tpu.memory_space<vmem>>, vector<8x128xf32>,
    return
  }
  func.func @transform_0(%arg0: i32) -> (i32, i32) {
    %c0_i32 = arith.constant 0 : i32
    %c0_i32_0 = arith.constant 0 : i32
    return %arg0, %c0_i32 : i32, i32
  }
  func.func @transform_1(%arg0: i32) -> (i32, i32) {
    %c0_i32 = arith.constant 0 : i32
    %c0_i32_0 = arith.constant 0 : i32
    %c0_i32_1 = arith.constant 0 : i32
    return %c0_i32, %c0_i32_0 : i32, i32
  }
  func.func @transform_2(%arg0: i32) -> (i32, i32) {
    %c0_i32 = arith.constant 0 : i32
    %c0_i32_0 = arith.constant 0 : i32
    %c0_i32_1 = arith.constant 0 : i32
    return %c0_i32, %c0_i32_0 : i32, i32
  }
  func.func @transform_3(%arg0: i32) -> (i32, i32) {
    %c0_i32 = arith.constant 0 : i32
    %c0_i32_0 = arith.constant 0 : i32
    %c0_i32_1 = arith.constant 0 : i32
    return %c0_i32, %c0_i32_0 : i32, i32
  }
  func.func @transform_4(%arg0: i32) -> (i32, i32) {
    %c0_i32 = arith.constant 0 : i32
    %c0_i32_0 = arith.constant 0 : i32
    %c0_i32_1 = arith.constant 0 : i32
    return %c0_i32, %c0_i32_0 : i32, i32
  }
  func.func @transform_5(%arg0: i32) -> (i32, i32) {
    %c0_i32 = arith.constant 0 : i32
    %c0_i32_0 = arith.constant 0 : i32
    %c0_i32_1 = arith.constant 0 : i32
    return %c0_i32, %c0_i32_0 : i32, i32
  }
  func.func @transform_6(%arg0: i32) -> (i32, i32) {
    %c0_i32 = arith.constant 0 : i32
    %c0_i32_0 = arith.constant 0 : i32
    %c0_i32_1 = arith.constant 0 : i32
    return %c0_i32, %c0_i32_0 : i32, i32
  }
  func.func @transform_7(%arg0: i32) -> (i32, i32) {
    %c0_i32 = arith.constant 0 : i32
    %c0_i32_0 = arith.constant 0 : i32
    %c0_i32_1 = arith.constant 0 : i32
    return %c0_i32, %c0_i32_0 : i32, i32
  }
  func.func @transform_8(%arg0: i32) -> (i32, i32) {
    %c0_i32 = arith.constant 0 : i32
    %c0_i32_0 = arith.constant 0 : i32
    %c0_i32_1 = arith.constant 0 : i32
    return %c0_i32, %c0_i32_0 : i32, i32
  }
  func.func @transform_9(%arg0: i32) -> (i32, i32) {
    %c0_i32 = arith.constant 0 : i32
    %c0_i32_0 = arith.constant 0 : i32
    return %arg0, %c0_i32 : i32, i32
  }
}

</mosaic_0001>

<bundles_post_ra>
// kernel: tpu_custom_call.1
= control target key start
LH: loop header
LB: loop body
LE: loop exit
PB: predicated region body
PF: predicated region fallthrough
CT: control target
= control target key end

     0   :  { %14 = vsyncpa [#allocation3], 0  ;;  %s575_s0 = inlined_call_operand.hbm [shape: f32[8,128], index: 0, kind: input, shape index: {}]   ;;  %s576_s1 = inlined_call_operand.hbm [shape: f32[128,128], index: 1, kind: input, shape index: {}]   ;;  %s577_s2 = inlined_call_operand.vmem [shape: f32[1,128], index: 2, kind: input, shape index: {}]   ;;  %s578_s3 = inlined_call_operand.hbm [shape: f32[128,128], index: 3, kind: input, shape index: {}]   ;;  %s579_s4 = inlined_call_operand.vmem [shape: f32[1,128], index: 4, kind: input, shape index: {}]   ;;  %s580_s5 = inlined_call_operand.hbm [shape: f32[128,128], index: 5, kind: input, shape index: {}]   ;;  %s581_s6 = inlined_call_operand.vmem [shape: f32[1,128], index: 6, kind: input, shape index: {}]   ;;  %s582_s7 = inlined_call_operand.hbm [shape: f32[128,128], index: 7, kind: input, shape index: {}]   ;;  %s583_s8 = inlined_call_operand.vmem [shape: f32[1,128], index: 8, kind: input, shape index: {}]   ;;  %s584_s9 = inlined_call_operand.hbm [shape: f32[8,128], index: 9, kind: output, shape index: {}]  }
   0x1   :  { %15 = vsyncpa [#allocation6], 0 }
   0x2   :  { %16 = vsyncpa [#allocation9], 0  ;;  %s33_s11 = sshll.u32 %s576_s1, 4  ;;  %s34_s11 = int_to_ptr.hbm [resolvable:$true] %s33_s11 }
   0x3   :  { %17 = vsyncpa [#allocation4], 0  ;;  %s487_s12 = smov [#allocation5]   ;;  %s63_s16 = sshll.u32 %s580_s5, 4  ;;  %s64_s16 = int_to_ptr.hbm [resolvable:$true] %s63_s16 }
   0x4   :  { %s35_s13 = sshll.u32 %s487_s12, 4  ;;  %s488_s17 = smov 128   ;;  %s36_s13 = int_to_ptr.vmem [resolvable:$true] %s35_s13 }
   0x5   :  { %s489_s18 = smov 8   ;;  %s490_s19 = smov [#allocation8]  }
   0x6   :  { %41 = dma.hbm_to_vmem [thread:$0]  %s34_s11, 2048, %s36_s13, [#allocation6], %s488_s17, %s488_s17, %s489_s18  }
   0x7   :  { %s65_s20 = sshll.u32 %s490_s19, 4  ;;  %s23_s23 = sshll.u32 %s575_s0, 4  ;;  %s66_s20 = int_to_ptr.vmem [resolvable:$true] %s65_s20  ;;  %s24_s23 = int_to_ptr.hbm [resolvable:$true] %s23_s23 }
   0x8   :  { %71 = dma.hbm_to_vmem [thread:$0]  %s64_s16, 2048, %s66_s20, [#allocation9], %s488_s17, %s488_s17, %s489_s18  }
   0x9   :  { %s48_s25 = sshll.u32 %s578_s3, 4  ;;  %s491_s26 = smov [#allocation2]   ;;  %s49_s25 = int_to_ptr.hbm [resolvable:$true] %s48_s25 }
   0xa   :  { %s25_s27 = sshll.u32 %s491_s26, 4  ;;  %s492_s5 = smov [#allocation7]   ;;  %s26_s27 = int_to_ptr.vmem [resolvable:$true] %s25_s27 }
   0xb   :  { %28 = dma.hbm_to_vmem [thread:$0]  %s24_s23, 128, %s26_s27, [#allocation3]  }
   0xc   :  { %s50_s28 = sshll.u32 %s492_s5, 4  ;;  %s78_s10 = sshll.u32 %s582_s7, 4  ;;  %s51_s28 = int_to_ptr.vmem [resolvable:$true] %s50_s28  ;;  %s79_s10 = int_to_ptr.hbm [resolvable:$true] %s78_s10 }
   0xd   :  { %56 = dma.hbm_to_vmem [thread:$0]  %s49_s25, 2048, %s51_s28, [#allocation6], %s488_s17, %s488_s17, %s489_s18  }
   0xe   :  { %s493_s0 = smov [#allocation10]  }
   0xf   :  { %s80_s11 = sshll.u32 %s493_s0, 4  ;;  %s81_s11 = int_to_ptr.vmem [resolvable:$true] %s80_s11 }
  0x10   :  { %86 = dma.hbm_to_vmem [thread:$0]  %s79_s10, 2048, %s81_s11, [#allocation9], %s488_s17, %s488_s17, %s489_s18  }
  0x11   :  { %479 = dma.done.wait [#allocation3], 128  }
  0x12   :  { %480 = vsyncadd [#allocation3], 4294967168 }
  0x13   :  { %481 = dma.done.wait [#allocation6], 4096  }
  0x14   :  { %482 = vsyncadd [#allocation6], 4294963200 }
  0x15   :  { %483 = dma.done.wait [#allocation9], 4096  }
  0x16   :  { %484 = vsyncadd [#allocation9], 4294963200  ;;  %v125_v0 = vld [vmem:[#allocation5 + $0x78] sm:$0xff]  ;;  %v124_v1 = vld [vmem:[#allocation5 + $0x70] sm:$0xff]  ;;  %s307_s18 = sshll.u32 %s584_s9, 4  ;;  %s308_s18 = int_to_ptr.hbm [resolvable:$true] %s307_s18 }
  0x17   :  { %130 = vmatpush.msra.mxu0 %v125_v0  ;;  %v123_v2 = vld [vmem:[#allocation5 + $0x68] sm:$0xff]  ;;  %v122_v3 = vld [vmem:[#allocation5 + $0x60] sm:$0xff]  ;;  %v166_v4 = vld [vmem:[#allocation7 + $0x78] sm:$0xff] }
  0x18   :  { %v121_v5 = vld [vmem:[#allocation5 + $0x58] sm:$0xff]  ;;  %171 = vmatpush.msra.mxu1 %v166_v4  ;;  %v165_v6 = vld [vmem:[#allocation7 + $0x70] sm:$0xff]  ;;  %v164_v7 = vld [vmem:[#allocation7 + $0x68] sm:$0xff] }
  0x19   :  { %131 = vmatpush.msra.mxu0 %v124_v1  ;;  %v120_v8 = vld [vmem:[#allocation5 + $0x50] sm:$0xff]  ;;  %v163_v9 = vld [vmem:[#allocation7 + $0x60] sm:$0xff]  ;;  %v119_v10 = vld [vmem:[#allocation5 + $0x48] sm:$0xff] }
  0x1a   :  { %172 = vmatpush.msra.mxu1 %v165_v6  ;;  %v162_v11 = vld [vmem:[#allocation7 + $0x58] sm:$0xff]  ;;  %v118_v12 = vld [vmem:[#allocation5 + $0x40] sm:$0xff]  ;;  %v161_v13 = vld [vmem:[#allocation7 + $0x50] sm:$0xff] }
  0x1b   :  { %132 = vmatpush.msra.mxu0 %v123_v2  ;;  %v117_v14 = vld [vmem:[#allocation5 + $0x38] sm:$0xff]  ;;  %v160_v15 = vld [vmem:[#allocation7 + $0x48] sm:$0xff]  ;;  %v116_v16 = vld [vmem:[#allocation5 + $0x30] sm:$0xff] }
  0x1c   :  { %173 = vmatpush.msra.mxu1 %v164_v7  ;;  %v159_v17 = vld [vmem:[#allocation7 + $0x40] sm:$0xff]  ;;  %v115_v18 = vld [vmem:[#allocation5 + $0x28] sm:$0xff]  ;;  %v158_v19 = vld [vmem:[#allocation7 + $0x38] sm:$0xff] }
  0x1d   :  { %133 = vmatpush.msra.mxu0 %v122_v3  ;;  %v114_v20 = vld [vmem:[#allocation5 + $0x20] sm:$0xff]  ;;  %v157_v21 = vld [vmem:[#allocation7 + $0x30] sm:$0xff]  ;;  %v113_v22 = vld [vmem:[#allocation5 + $0x18] sm:$0xff] }
  0x1e   :  { %174 = vmatpush.msra.mxu1 %v163_v9  ;;  %v156_v23 = vld [vmem:[#allocation7 + $0x28] sm:$0xff]  ;;  %v112_v24 = vld [vmem:[#allocation5 + $0x10] sm:$0xff]  ;;  %v155_v25 = vld [vmem:[#allocation7 + $0x20] sm:$0xff] }
  0x1f   :  { %134 = vmatpush.msra.mxu0 %v121_v5  ;;  %v111_v26 = vld [vmem:[#allocation5 + $0x8] sm:$0xff]  ;;  %v154_v27 = vld [vmem:[#allocation7 + $0x18] sm:$0xff]  ;;  %v110_v28 = vld [vmem:[#allocation5] sm:$0xff] }
  0x20   :  { %175 = vmatpush.msra.mxu1 %v162_v11  ;;  %v109_v29 = vld [vmem:[#allocation2] sm:$0xff]  ;;  %v153_v30 = vld [vmem:[#allocation7 + $0x10] sm:$0xff]  ;;  %v152_v31 = vld [vmem:[#allocation7 + $0x8] sm:$0xff] }
  0x21   :  { %135 = vmatpush.msra.mxu0 %v120_v8  ;;  %v151_v32 = vld [vmem:[#allocation7] sm:$0xff]  ;;  %v207_v33 = vld [vmem:[#allocation8 + $0x78] sm:$0xff]  ;;  %v206_v34 = vld [vmem:[#allocation8 + $0x70] sm:$0xff] }
  0x22   :  { %176 = vmatpush.msra.mxu1 %v161_v13  ;;  %212 = vmatpush.msra.mxu2 %v207_v33  ;;  %v205_v35 = vld [vmem:[#allocation8 + $0x68] sm:$0xff]  ;;  %v204_v36 = vld [vmem:[#allocation8 + $0x60] sm:$0xff]  ;;  %v203_v37 = vld [vmem:[#allocation8 + $0x58] sm:$0xff]  ;;  %v273_v13 = vlaneseq }
  0x23   :  { %136 = vmatpush.msra.mxu0 %v119_v10  ;;  %v202_v38 = vld [vmem:[#allocation8 + $0x50] sm:$0xff]  ;;  %v201_v39 = vld [vmem:[#allocation8 + $0x48] sm:$0xff]  ;;  %v200_v40 = vld [vmem:[#allocation8 + $0x40] sm:$0xff] }
  0x24   :  { %177 = vmatpush.msra.mxu1 %v160_v15  ;;  %213 = vmatpush.msra.mxu2 %v206_v34  ;;  %v199_v41 = vld [vmem:[#allocation8 + $0x38] sm:$0xff]  ;;  %v198_v42 = vld [vmem:[#allocation8 + $0x30] sm:$0xff]  ;;  %v197_v43 = vld [vmem:[#allocation8 + $0x28] sm:$0xff] }
  0x25   :  { %137 = vmatpush.msra.mxu0 %v118_v12  ;;  %v196_v44 = vld [vmem:[#allocation8 + $0x20] sm:$0xff]  ;;  %v195_v45 = vld [vmem:[#allocation8 + $0x18] sm:$0xff]  ;;  %v194_v50 = vld [vmem:[#allocation8 + $0x10] sm:$0xff] }
  0x26   :  { %178 = vmatpush.msra.mxu1 %v159_v17  ;;  %214 = vmatpush.msra.mxu2 %v205_v35  ;;  %v327_v46 = vld [vmem:[%s577_s2] ss:$0 sm:$0xff]  ;;  %v193_v51 = vld [vmem:[#allocation8 + $0x8] sm:$0xff]  ;;  %v192_v52 = vld [vmem:[#allocation8] sm:$0xff] }
  0x27   :  { %138 = vmatpush.msra.mxu0 %v117_v14  ;;  %v248_v53 = vld [vmem:[#allocation10 + $0x78] sm:$0xff]  ;;  %v247_v54 = vld [vmem:[#allocation10 + $0x70] sm:$0xff]  ;;  %v246_v55 = vld [vmem:[#allocation10 + $0x68] sm:$0xff]  ;;  %v274_v14 = vand.u32 127, %v273_v13 }
  0x28   :  { %179 = vmatpush.msra.mxu1 %v158_v19  ;;  %215 = vmatpush.msra.mxu2 %v204_v36  ;;  %v245_v56 = vld [vmem:[#allocation10 + $0x60] sm:$0xff]  ;;  %v244_v57 = vld [vmem:[#allocation10 + $0x58] sm:$0xff]  ;;  %v243_v58 = vld [vmem:[#allocation10 + $0x50] sm:$0xff] }
  0x29   :  { %139 = vmatpush.msra.mxu0 %v116_v16  ;;  %253 = vmatpush.msra.mxu3 %v248_v53  ;;  %v242_v59 = vld [vmem:[#allocation10 + $0x48] sm:$0xff]  ;;  %v241_v60 = vld [vmem:[#allocation10 + $0x40] sm:$0xff]  ;;  %v240_v61 = vld [vmem:[#allocation10 + $0x38] sm:$0xff]  ;;  %vm275_vm0 = vcmp.lt.s32.totalorder %v274_v14, 16 }
  0x2a   :  { %180 = vmatpush.msra.mxu1 %v157_v21  ;;  %216 = vmatpush.msra.mxu2 %v203_v37  ;;  %v239_v62 = vld [vmem:[#allocation10 + $0x30] sm:$0xff]  ;;  %v238_v63 = vld [vmem:[#allocation10 + $0x28] sm:$0xff]  ;;  %v237_v0 = vld [vmem:[#allocation10 + $0x20] sm:$0xff] }
  0x2b   :  { %140 = vmatpush.msra.mxu0 %v115_v18  ;;  %254 = vmatpush.msra.mxu3 %v247_v54  ;;  %v236_v1 = vld [vmem:[#allocation10 + $0x18] sm:$0xff]  ;;  %v235_v6 = vld [vmem:[#allocation10 + $0x10] sm:$0xff]  ;;  %v234_v7 = vld [vmem:[#allocation10 + $0x8] sm:$0xff] }
  0x2c   :  { %181 = vmatpush.msra.mxu1 %v156_v23  ;;  %217 = vmatpush.msra.mxu2 %v202_v38  ;;  %v328_v2 = vld [vmem:[%s579_s4] ss:$0 sm:$0xff]  ;;  %v233_v8 = vld [vmem:[#allocation10] sm:$0xff] }
  0x2d   :  { %141 = vmatpush.msra.mxu0 %v114_v20  ;;  %255 = vmatpush.msra.mxu3 %v246_v55  ;;  %v329_v9 = vld [vmem:[%s581_s6] ss:$0 sm:$0xff]  ;;  %s494_s6 = smov [#allocation11]  }
  0x2e   :  { %182 = vmatpush.msra.mxu1 %v155_v25  ;;  %218 = vmatpush.msra.mxu2 %v201_v39  ;;  %v330_v15 = vld [vmem:[%s583_s8] ss:$0 sm:$0xff]  ;;  %s305_s8 = sshll.u32 %s494_s6, 4  ;;  %s306_s8 = int_to_ptr.vmem [resolvable:$true] %s305_s8 }
  0x2f   :  { %142 = vmatpush.msra.mxu0 %v113_v22  ;;  %256 = vmatpush.msra.mxu3 %v245_v56 }
  0x30   :  { %183 = vmatpush.msra.mxu1 %v154_v27  ;;  %219 = vmatpush.msra.mxu2 %v200_v40 }
  0x31   :  { %143 = vmatpush.msra.mxu0 %v112_v24  ;;  %257 = vmatpush.msra.mxu3 %v244_v57 }
  0x32   :  { %184 = vmatpush.msra.mxu1 %v153_v30  ;;  %220 = vmatpush.msra.mxu2 %v199_v41 }
  0x33   :  { %144 = vmatpush.msra.mxu0 %v111_v26  ;;  %258 = vmatpush.msra.mxu3 %v243_v58 }
  0x34   :  { %185 = vmatpush.msra.mxu1 %v152_v31  ;;  %221 = vmatpush.msra.mxu2 %v198_v42 }
  0x35   :  { %145 = vmatpush.msra.mxu0 %v110_v28  ;;  %259 = vmatpush.msra.mxu3 %v242_v59 }
  0x36   :  { %146 = vmatmul.f32.vlgmr.msra.gmra.mxu0 %v109_v29  ;;  %186 = vmatpush.msra.mxu1 %v151_v32 }
  0x37   :  { %222 = vmatpush.msra.mxu2 %v197_v43  ;;  %260 = vmatpush.msra.mxu3 %v241_v60 }
  0x39   :  { %223 = vmatpush.msra.mxu2 %v196_v44  ;;  %261 = vmatpush.msra.mxu3 %v240_v61 }
  0x3b   :  { %224 = vmatpush.msra.mxu2 %v195_v45  ;;  %262 = vmatpush.msra.mxu3 %v239_v62 }
  0x3d   :  { %225 = vmatpush.msra.mxu2 %v194_v50  ;;  %263 = vmatpush.msra.mxu3 %v238_v63 }
  0x3f   :  { %226 = vmatpush.msra.mxu2 %v193_v51  ;;  %264 = vmatpush.msra.mxu3 %v237_v0 }
  0x41   :  { %227 = vmatpush.msra.mxu2 %v192_v52  ;;  %265 = vmatpush.msra.mxu3 %v236_v1 }
  0x43   :  { %266 = vmatpush.msra.mxu3 %v235_v6 }
  0x45   :  { %267 = vmatpush.msra.mxu3 %v234_v7 }
  0x47   :  { %268 = vmatpush.msra.mxu3 %v233_v8 }
  0xb3   :  { %v147_v47 = vpop.f32.mrf.mxu0 }
  0xb4   :  { %v148_v48 = vadd.f32 %v327_v46, %v147_v47 }
  0xb6   :  { %v150_v49 = vmax.f32 %v148_v48, 0.0 }
  0xb8   :  { %187 = vmatmul.f32.vlgmr.msra.gmra.mxu1 %v150_v49 }
 0x135   :  { %v188_v3 = vpop.f32.mrf.mxu1 }
 0x136   :  { %v189_v4 = vadd.f32 %v328_v2, %v188_v3 }
 0x138   :  { %v191_v5 = vmax.f32 %v189_v4, 0.0 }
 0x13a   :  { %228 = vmatmul.f32.vlgmr.msra.gmra.mxu2 %v191_v5 }
 0x1bd   :  { %v229_v10 = vpop.f32.mrf.mxu2 }
 0x1be   :  { %v230_v11 = vadd.f32 %v329_v9, %v229_v10 }
 0x1c0   :  { %v232_v12 = vmax.f32 %v230_v11, 0.0 }
 0x1c2   :  { %269 = vmatmul.f32.vlgmr.msra.gmra.mxu3 %v232_v12 }
 0x245   :  { %v270_v16 = vpop.f32.mrf.mxu3 }
 0x246   :  { %v271_v17 = vadd.f32 %v330_v15, %v270_v16 }
 0x248   :  { %v276_v18 = vsel %vm275_vm0, %v271_v17, -1e+30 }
 0x249   :  { %277 = vmax.xlane.f32.xlu0 %v276_v18 }
 0x2bc   :  { %v278_v19 = vpop.xlane.xlu0 %277 }
 0x2bd   :  { %v279_v20 = vsub.f32 %v276_v18, %v278_v19 }
 0x2bf   :  { %v280_v21 = vmul.f32 1.442695, %v279_v20 }
 0x2c1   :  { %331 = vpow2.f32 %v280_v21 }
 0x2c7   :  { %v332_v22 = vpop.eup %331 }
 0x2c8   :  { %282 = vadd.xlane.f32.xlu0 %v332_v22 }
 0x33b   :  { %v283_v23 = vpop.xlane.xlu0 %282 }
 0x33c   :  { %333 = vrcp.f32 %v283_v23  ;;  %v295_v27 = vand.u32 2147483648, %v283_v23  ;;  %v293_v29 = vand.u32 2147483647, %v283_v23  ;;  %vm289_vm2 = vweird.f32 %v283_v23 }
 0x33e   :  { %v296_v31 = vor.u32 1.1754944e-38, %v295_v27  ;;  %vm294_vm4 = vcmp.eq.f32.partialorder %v293_v29, 8.507059e+37 }
 0x342   :  { %v334_v24 = vpop.eup %333 }
 0x343   :  { %v285_v25 = vmul.f32 %v334_v24, %v283_v23  ;;  %vm290_vm1 = vweird.f32 %v334_v24 }
 0x344   :  { %vm291_vm3 = vmor %vm289_vm2, %vm290_vm1 }
 0x345   :  { %v286_v26 = vsub.f32 1.0, %v285_v25 }
 0x347   :  { %v287_v28 = vmul.f32 %v334_v24, %v286_v26 }
 0x349   :  { %v288_v30 = vadd.f32 %v334_v24, %v287_v28 }
 0x34b   :  { %v292_v32 = vsel %vm291_vm3, %v334_v24, %v288_v30 }
 0x34c   :  { %v297_v33 = vsel %vm294_vm4, %v296_v31, %v292_v32 }
 0x34d   :  { %v298_v34 = vmul.f32 %v332_v22, %v297_v33 }
 0x34f   :  { %299 = vst [vmem:[#allocation11] sm:$0xff] %v298_v34 }
 0x350   :  { %310 = dma.vmem_to_hbm [thread:$0]  %s306_s8, 128, %s308_s18, [#allocation4]  }
 0x351   :  { %485 = dma.done.wait [#allocation4], 128  }
 0x352   :  { %486 = vsyncadd [#allocation4], 4294967168 }
 0x353   :  { %315 = vsyncpa [#allocation3], 1 }
 0x354   :  { %316 = vsyncpa [#allocation6], 1 }
 0x355   :  { %317 = vsyncpa [#allocation9], 1 }
 0x356   :  { %318 = vsyncpa [#allocation4], 1 }

</bundles_post_ra>
